<compile_context>
chip_gen: v6e
topology: v6e:2x2x1
jax: 0.10.0
libtpu: 0.0.40
codegen_flags: <defaults>
</compile_context>

<pallas_src>
import math
import functools

import jax
import jax.numpy as jnp
from jax.experimental import pallas as pl
from jax.experimental.pallas import tpu as pltpu


def _round_up(x, m):
    return ((x + m - 1) // m) * m


def _pe_kernel(pe_lo_ref, ce_lo_ref, cos_hi_ref, sin_hi_ref, o_ref):
    """One (rt, lane) tile of the PE table via the angle-addition identity.

    pe[hi + lo, j] = pe_lo[lo, j]*cos(hi*freq[j]) + ce_lo[lo, j]*sin(hi*freq[j])

    pe_lo holds sin/cos of the in-tile ("lo") angles with even/odd feature
    columns already interleaved exactly like the PyTorch buffer; ce_lo is its
    quarter-turn companion (cos / -sin).  The per-tile "hi" offset arrives as
    one precomputed 128-lane row.  Hot loop = 2 mul + 1 add per element.
    """
    cos_hi = cos_hi_ref[0]            # (1, lane), broadcast over rows
    sin_hi = sin_hi_ref[0]
    o_ref[...] = (pe_lo_ref[...] * cos_hi
                  + ce_lo_ref[...] * sin_hi).astype(o_ref.dtype)


def _base_tables(n_pos, d_model):
    """f32 sin/cos tables for positions [0, n_pos), mirroring the reference math."""
    position = jnp.arange(n_pos, dtype=jnp.float32)[:, None]
    div_term = jnp.exp(jnp.arange(0, d_model, 2, dtype=jnp.float32)
                       * (-math.log(10000.0) / d_model))
    ang = position * div_term                      # (n_pos, d_model//2)
    s, c = jnp.sin(ang), jnp.cos(ang)
    pe = jnp.zeros((n_pos, d_model), jnp.float32)
    pe = pe.at[:, 0::2].set(s).at[:, 1::2].set(c)  # == reference pe rows
    ce = jnp.zeros((n_pos, d_model), jnp.float32)
    ce = ce.at[:, 0::2].set(c).at[:, 1::2].set(-s) # quarter-turn companion
    return pe, ce, div_term


@functools.lru_cache(maxsize=32)   # bounded cache (was unbounded before)
def _pe_table(seq, d_model, row_tile, dtype_name):
    assert d_model % 2 == 0, "d_model must be even (same constraint as PyTorch ref)"
    out_dtype = jnp.dtype(dtype_name)

    # Lane-dense packing: fold p consecutive positions into one 128-lane row
    # when d_model is narrow, so stores are full unmasked vst's.
    p = 128 // d_model if (d_model < 128 and 128 % d_model == 0) else 1
    lane = d_model * p

    rows_needed = pl.cdiv(seq, p)              # packed rows that must be valid

    # VMEM-safe packed-row tile (multiple of 8 sublanes): double-buffered
    # output tile + (up to) double-buffered resident lo tables <= 8 MiB.
    vmem_budget = 8 * 1024 * 1024
    rt = vmem_budget // (6 * lane * 4)
    rt = min(rt, max(1, row_tile // p))
    rt = min(rt, _round_up(rows_needed, 8))
    rt = max(8, (rt // 8) * 8)

    num_tiles = pl.cdiv(rows_needed, rt)
    total_rows = num_tiles * rt                # generate full tiles only

    # Host-precomputed constants ------------------------------------------
    # lo tables: the first rt*p positions of the reference table (and its
    # quarter-turn companion), packed row-major into (rt, lane).
    pe_lo, ce_lo, div_term = _base_tables(rt * p, d_model)
    pe_lo = pe_lo.reshape(rt, lane)
    ce_lo = ce_lo.reshape(rt, lane)

    # hi tables: per-tile offset angle, one 128-lane row per grid step.
    freq_lane = jnp.tile(jnp.repeat(div_term, 2), p)                    # (lane,)
    hi_pos = (jnp.arange(num_tiles, dtype=jnp.float32) * float(rt * p))[:, None]
    hi_ang = hi_pos * freq_lane[None, :]                                # (num_tiles, lane)
    cos_hi = jnp.cos(hi_ang).reshape(num_tiles, 1, lane)
    sin_hi = jnp.sin(hi_ang).reshape(num_tiles, 1, lane)

    pe_flat = pl.pallas_call(
        _pe_kernel,
        out_shape=jax.ShapeDtypeStruct((total_rows, lane), out_dtype),
        grid=(num_tiles,),
        in_specs=[
            pl.BlockSpec((rt, lane), lambda i: (0, 0)),        # pe_lo (resident)
            pl.BlockSpec((rt, lane), lambda i: (0, 0)),        # ce_lo (resident)
            pl.BlockSpec((1, 1, lane), lambda i: (i, 0, 0)),   # cos_hi row for tile i
            pl.BlockSpec((1, 1, lane), lambda i: (i, 0, 0)),   # sin_hi row for tile i
        ],
        out_specs=pl.BlockSpec((rt, lane), lambda i: (i, 0)),
        compiler_params=pltpu.CompilerParams(
            dimension_semantics=("parallel",)),
    )(pe_lo, ce_lo, cos_hi, sin_hi)

    # un-pack lanes -> features, drop padded tail, add the batch axis.
    pe = pe_flat.reshape(total_rows * p, d_model)[:seq]
    return pe[:, None, :]


def positional_encoding(x, d_model, *, row_tile=1024, dtype=jnp.float32):
    """Equivalent of PositionalEncoding(d_model).forward(x) -> (seq, 1, d_model)."""
    # The output never reads x's values; only x.shape[0] matters (matches the
    # PyTorch module, whose pe buffer is precomputed once and sliced).
    return _pe_table(int(x.shape[0]), int(d_model), int(row_tile),
                     jnp.dtype(dtype).name)


def _reference(seq, d_model):
    """Pure-JAX f32 reference mirroring the PyTorch buffer construction."""
    position = jnp.arange(seq, dtype=jnp.float32)[:, None]
    div_term = jnp.exp(jnp.arange(0, d_model, 2, dtype=jnp.float32)
                       * (-math.log(10000.0) / d_model))
    pe = jnp.zeros((seq, d_model), dtype=jnp.float32)
    pe = pe.at[:, 0::2].set(jnp.sin(position * div_term))
    pe = pe.at[:, 1::2].set(jnp.cos(position * div_term))
    return pe[:, None, :]


if __name__ == "__main__":
    key = jax.random.PRNGKey(0)
    seq, batch, d_model = 8, 2, 32
    # layout: (seq, batch, d_model) — seq-first, matching x.size(0) in PyTorch.
    x = jax.random.normal(key, (seq, batch, d_model), dtype=jnp.float32)

    out = jax.block_until_ready(positional_encoding(x, d_model))
    ref = _reference(seq, d_model)
    assert out.shape == (seq, 1, d_model), out.shape
    assert jnp.allclose(out, ref, atol=1e-5, rtol=1e-5), "mismatch vs reference (seq=8)"

    # non-multiple-of-tile sequence length (padded tail sliced off)
    seq2 = 300
    x2 = jnp.zeros((seq2, batch, d_model), dtype=jnp.float32)
    out2 = jax.block_until_ready(positional_encoding(x2, d_model))
    assert out2.shape == (seq2, 1, d_model), out2.shape
    assert jnp.allclose(out2, _reference(seq2, d_model), atol=1e-5, rtol=1e-5), \
        "mismatch vs reference (seq=300)"

    # multi-tile path (several grid steps).  For pos ~ 3000 both the kernel and
    # the direct f32 reference round the sin/cos argument at the ~1e-4 level
    # (f32 ulp of pos*freq), so compare at a tolerance reflecting that shared
    # f32 noise; any real indexing/packing bug would be O(1) and still caught.
    seq3 = 3000
    x3 = jnp.zeros((seq3, batch, d_model), dtype=jnp.float32)
    out3 = jax.block_until_ready(positional_encoding(x3, d_model, row_tile=1024))
    assert out3.shape == (seq3, 1, d_model), out3.shape
    assert jnp.allclose(out3, _reference(seq3, d_model), atol=5e-4, rtol=1e-3), \
        "mismatch vs reference (seq=3000, multi-tile)"

    print("KERNEL_OK")
</pallas_src>

<mosaic_0001>
module attributes {stable_mosaic.version = 11 : i64} {
  func.func @_pe_kernel(%arg0: i32, %arg1: memref<8x128xf32, #tpu.memory_space<vmem>>, %arg2: memref<8x128xf32, #tpu.memory_space<vmem>>, %arg3: memref<1x1x128xf32, #tpu.memory_space<vmem>>, %arg4: memref<1x1x128xf32, #tpu.memory_space<vmem>>, %arg5: memref<8x128xf32, #tpu.memory_space<vmem>>) attributes {dimension_semantics = [#tpu.dimension_semantics<parallel>], iteration_bounds = array<i64: 1>, scalar_prefetch = 0 : i64, scratch_operands = 0 : i64, tpu.core_type = #tpu.core_type<tc>, window_params = [{pipeline_mode = #tpu.pipeline_mode<synchronous>, transform_indices = @transform_0, window_bounds = array<i64: 8, 128>}, {pipeline_mode = #tpu.pipeline_mode<synchronous>, transform_indices = @transform_1, window_bounds = array<i64: 8, 128>}, {transform_indices = @transform_2, window_bounds = array<i64: 1, 1, 128>}, {transform_indices = @transform_3, window_bounds = array<i64: 1, 1, 128>}, {transform_indices = @transform_4, window_bounds = array<i64: 8, 128>}]} {
    %c0 = arith.constant 0 : index
    %c0_0 = arith.constant 0 : index
    %c0_1 = arith.constant 0 : index
    %0 = vector.load %arg3[%c0, %c0_0, %c0_1] : memref<1x1x128xf32, #tpu.memory_space<vmem>>, vector<1x1x128xf32>
    %1 = vector.shape_cast %0 : vector<1x1x128xf32> to vector<1x128xf32>
    %c0_2 = arith.constant 0 : index
    %c0_3 = arith.constant 0 : index
    %c0_4 = arith.constant 0 : index
    %2 = vector.load %arg4[%c0_2, %c0_3, %c0_4] : memref<1x1x128xf32, #tpu.memory_space<vmem>>, vector<1x1x128xf32>
    %3 = vector.shape_cast %2 : vector<1x1x128xf32> to vector<1x128xf32>
    %c0_5 = arith.constant 0 : index
    %c0_6 = arith.constant 0 : index
    %4 = vector.load %arg1[%c0_5, %c0_6] : memref<8x128xf32, #tpu.memory_space<vmem>>, vector<8x128xf32>
    %5 = vector.broadcast %1 : vector<1x128xf32> to vector<8x128xf32>
    %6 = arith.mulf %4, %5 : vector<8x128xf32>
    %c0_7 = arith.constant 0 : index
    %c0_8 = arith.constant 0 : index
    %7 = vector.load %arg2[%c0_7, %c0_8] : memref<8x128xf32, #tpu.memory_space<vmem>>, vector<8x128xf32>
    %8 = vector.broadcast %3 : vector<1x128xf32> to vector<8x128xf32>
    %9 = arith.mulf %7, %8 : vector<8x128xf32>
    %10 = arith.addf %6, %9 : vector<8x128xf32>
    %c0_9 = arith.constant 0 : index
    %c0_10 = arith.constant 0 : index
    %11 = vector.load %arg5[%c0_9, %c0_10] : memref<8x128xf32, #tpu.memory_space<vmem>>, vector<8x128xf32>
    tpu.vector_store %arg5[%c0_9, %c0_10], %10 {strides = array<i32>} : memref<8x128xf32, #tpu.memory_space<vmem>>, vector<8x128xf32>,
    return
  }
  func.func @transform_0(%arg0: i32) -> (i32, i32) {
    %c0_i32 = arith.constant 0 : i32
    %c0_i32_0 = arith.constant 0 : i32
    %c0_i32_1 = arith.constant 0 : i32
    return %c0_i32, %c0_i32_0 : i32, i32
  }
  func.func @transform_1(%arg0: i32) -> (i32, i32) {
    %c0_i32 = arith.constant 0 : i32
    %c0_i32_0 = arith.constant 0 : i32
    %c0_i32_1 = arith.constant 0 : i32
    return %c0_i32, %c0_i32_0 : i32, i32
  }
  func.func @transform_2(%arg0: i32) -> (i32, i32, i32) {
    %c0_i32 = arith.constant 0 : i32
    %c0_i32_0 = arith.constant 0 : i32
    %c0_i32_1 = arith.constant 0 : i32
    return %arg0, %c0_i32, %c0_i32_0 : i32, i32, i32
  }
  func.func @transform_3(%arg0: i32) -> (i32, i32, i32) {
    %c0_i32 = arith.constant 0 : i32
    %c0_i32_0 = arith.constant 0 : i32
    %c0_i32_1 = arith.constant 0 : i32
    return %arg0, %c0_i32, %c0_i32_0 : i32, i32, i32
  }
  func.func @transform_4(%arg0: i32) -> (i32, i32) {
    %c0_i32 = arith.constant 0 : i32
    %c0_i32_0 = arith.constant 0 : i32
    return %arg0, %c0_i32 : i32, i32
  }
}

</mosaic_0001>

<bundles_post_ra>
// kernel: tpu_custom_call.1
= control target key start
LH: loop header
LB: loop body
LE: loop exit
PB: predicated region body
PF: predicated region fallthrough
CT: control target
= control target key end

     0   :  { %9 = vsyncpa [#allocation3], 0  ;;  %s192_s0 = inlined_call_operand.hbm [shape: f32[8,128], index: 0, kind: input, shape index: {}]   ;;  %s193_s1 = inlined_call_operand.hbm [shape: f32[8,128], index: 1, kind: input, shape index: {}]   ;;  %s194_s2 = inlined_call_operand.vmem [shape: f32[1,1,128], index: 2, kind: input, shape index: {}]   ;;  %s195_s3 = inlined_call_operand.vmem [shape: f32[1,1,128], index: 3, kind: input, shape index: {}]   ;;  %s196_s4 = inlined_call_operand.hbm [shape: f32[8,128], index: 4, kind: output, shape index: {}]  }
   0x1   :  { %10 = vsyncpa [#allocation6], 0 }
   0x2   :  { %11 = vsyncpa [#allocation4], 0  ;;  %s149_s15 = smov [#allocation2]   ;;  %s150_s17 = smov [#allocation5]  }
   0x3   :  { %s18_s16 = sshll.u32 %s149_s15, 4  ;;  %s28_s18 = sshll.u32 %s150_s17, 4  ;;  %s19_s16 = int_to_ptr.vmem [resolvable:$true] %s18_s16  ;;  %s29_s18 = int_to_ptr.vmem [resolvable:$true] %s28_s18 }
   0x4   :  { %s91_s19 = scalar_lea.vmem %s19_s16, 128  ;;  %p96_p1 = scmp.lt.s32.totalorder %s19_s16, %s19_s16 }
   0x5   :  { %p92_p0 = scmp.ne.s32.totalorder %s19_s16, %s91_s19  ;;  %p97_p2 = scmp.lt.s32.totalorder %s91_s19, %s91_s19 }
   0x7   :  { %p98_p3 = por %p97_p2, %p96_p1 }
   0x9   :  { %p99_p4 = pnand %p98_p3, %p92_p0 }
   0xb   :  { %102 = shalt.err (!%p99_p4)
}
   0xc   :  { %21 = dma.hbm_to_vmem [thread:$0]  %s192_s0, 128, %s19_s16, [#allocation3]  }
   0xd   :  { %s111_s22 = scalar_lea.vmem %s29_s18, 128  ;;  %p116_p6 = scmp.lt.s32.totalorder %s29_s18, %s29_s18 }
   0xe   :  { %p112_p5 = scmp.ne.s32.totalorder %s29_s18, %s111_s22  ;;  %p117_p7 = scmp.lt.s32.totalorder %s111_s22, %s111_s22 }
  0x10   :  { %p118_p8 = por %p117_p7, %p116_p6 }
  0x12   :  { %p119_p9 = pnand %p118_p8, %p112_p5 }
  0x14   :  { %122 = shalt.err (!%p119_p9)
}
  0x15   :  { %31 = dma.hbm_to_vmem [thread:$0]  %s193_s1, 128, %s29_s18, [#allocation6]  }
  0x16   :  { %143 = dma.done.wait [#allocation3], 128  }
  0x17   :  { %144 = vsyncadd [#allocation3], 4294967168 }
  0x18   :  { %145 = dma.done.wait [#allocation6], 128  }
  0x19   :  { %146 = vsyncadd [#allocation6], 4294967168  ;;  %v78_v0 = vld [vmem:[%s194_s2] ss:$0 sm:$0xff]  ;;  %v52_v4 = vld [vmem:[#allocation5] sm:$0xff]  ;;  %s151_s28 = smov [#allocation7]  }
  0x1a   :  { %v79_v1 = vld [vmem:[%s195_s3] ss:$0 sm:$0xff]  ;;  %s68_s29 = sshll.u32 %s151_s28, 4  ;;  %s69_s29 = int_to_ptr.vmem [resolvable:$true] %s68_s29 }
  0x1b   :  { %v44_v2 = vld [vmem:[#allocation2] sm:$0xff]  ;;  %v59_v5 = vmul.f32 %v79_v1, %v52_v4  ;;  %s123_s1 = scalar_lea.vmem %s69_s29, 128  ;;  %p128_p11 = scmp.lt.s32.totalorder %s69_s29, %s69_s29 }
  0x1c   :  { %v51_v3 = vmul.f32 %v78_v0, %v44_v2  ;;  %p124_p10 = scmp.ne.s32.totalorder %s69_s29, %s123_s1  ;;  %p129_p12 = scmp.lt.s32.totalorder %s123_s1, %s123_s1 }
  0x1e   :  { %v60_v6 = vadd.f32 %v59_v5, %v51_v3  ;;  %p130_p13 = por %p129_p12, %p128_p11 }
  0x20   :  { %61 = vst [vmem:[#allocation7] sm:$0xff] %v60_v6  ;;  %p131_p0 = pnand %p130_p13, %p124_p10 }
  0x22   :  { %134 = shalt.err (!%p131_p0)
}
  0x23   :  { %71 = dma.vmem_to_hbm [thread:$0]  %s69_s29, 128, %s196_s4, [#allocation4]  }
  0x24   :  { %147 = dma.done.wait [#allocation4], 128  }
  0x25   :  { %148 = vsyncadd [#allocation4], 4294967168 }
  0x26   :  { %75 = vsyncpa [#allocation3], 1 }
  0x27   :  { %76 = vsyncpa [#allocation6], 1 }
  0x28   :  { %77 = vsyncpa [#allocation4], 1 }

</bundles_post_ra>
